<compile_context>
chip_gen: v7x
topology: tpu7x:2x2x1
jax: 0.10.0
libtpu: 0.0.40
codegen_flags: <defaults>
</compile_context>

<pallas_src>
import math

import jax
import jax.numpy as jnp
from jax.experimental import pallas as pl
from jax.experimental.pallas import tpu as pltpu

NEG_SLOPE = 0.01  # nn.LeakyReLU() default negative_slope


def _round_up(x, m):
    return ((x + m - 1) // m) * m


def _tpu_params():
    """Returns (tn_pref, vmem_budget_bytes), generation dependent."""
    kind = ""
    try:
        kind = jax.devices()[0].device_kind.lower()
    except Exception:
        pass
    vmem_cap = None
    try:
        vmem_cap = int(pltpu.get_tpu_info().vmem_capacity_bytes)
    except Exception:
        vmem_cap = None
    if not vmem_cap:
        vmem_cap = (64 << 20) if "7" in kind else (128 << 20)
    # v5e (and older) MXUs are 128 wide: a 256-wide Cout tile only pays off on
    # the 256-wide arrays of v6e/v7x and doubles the acc/weight footprint.
    older = any(t in kind for t in ("v2", "v3", "v4", "v5"))
    tn_pref = 128 if older else 256
    return tn_pref, int(vmem_cap * 3 // 4)


# ----------------------------------------------------------------------------
# Pallas kernel: tiled GEMM with fused bias + LeakyReLU epilogue
#   x_ref: (TM, TK)  bf16 im2col patches
#   w_ref: (TK, TN)  bf16 weights
#   b_ref: (1, TN)   f32 bias
#   o_ref: (TM, TN)  bf16 output
#   acc_ref: (TM, TN) f32 VMEM scratch accumulator
# ----------------------------------------------------------------------------
def _gemm_bias_lrelu_kernel(neg_slope):
    def kernel(x_ref, w_ref, b_ref, o_ref, acc_ref):
        @pl.when(pl.program_id(2) == 0)
        def _():
            # bias as the accumulator init (saves a full-size add pass)
            acc_ref[...] = jnp.broadcast_to(b_ref[...], acc_ref.shape)

        acc_ref[...] += jnp.dot(x_ref[...], w_ref[...],
                                preferred_element_type=jnp.float32)

        @pl.when(pl.program_id(2) == pl.num_programs(2) - 1)
        def _():
            a = acc_ref[...]
            o_ref[...] = jnp.maximum(a, neg_slope * a).astype(o_ref.dtype)

    return kernel


# ----------------------------------------------------------------------------
# Wrapper helpers
# ----------------------------------------------------------------------------
def _im2col(x_pad, k, stride, h_out, w_out):
    """(N, Hp, Wp, Cin) -> (N*Hout*Wout, K*K*Cin); stride handled here so the
    kernel only does contiguous loads."""
    n, hp, wp, cin = x_pad.shape
    cols = []
    for kh in range(k):
        for kw in range(k):
            cols.append(jax.lax.slice(
                x_pad,
                (0, kh, kw, 0),
                (n, kh + (h_out - 1) * stride + 1,
                 kw + (w_out - 1) * stride + 1, cin),
                (1, stride, stride, 1)))
    patches = jnp.concatenate(cols, axis=-1)          # (N, Hout, Wout, K*K*Cin)
    return patches.reshape(n * h_out * w_out, k * k * cin)


# ----------------------------------------------------------------------------
# NHWC fast path: LeakyReLUConv2d forward (channel-last in / channel-last out)
# ----------------------------------------------------------------------------
def leaky_relu_conv2d_nhwc(x_nhwc, w_oihw, bias, *, stride=1, padding=0,
                           negative_slope=NEG_SLOPE,
                           compute_dtype=jnp.bfloat16,
                           out_dtype=jnp.bfloat16):
    """ReflectionPad2d(padding) -> Conv2d(stride, pad=0, bias) -> LeakyReLU."""
    n, h, w, cin = x_nhwc.shape
    cout, cin_w, k, k2 = w_oihw.shape
    assert cin == cin_w and k == k2, (x_nhwc.shape, w_oihw.shape)

    tn_pref, vmem_budget = _tpu_params()

    # Cast + reflection pad (single XLA data-movement pass), matches
    # nn.ReflectionPad2d exactly (edge not repeated).
    x = x_nhwc.astype(compute_dtype)
    if padding:
        x = jnp.pad(x, ((0, 0), (padding, padding), (padding, padding), (0, 0)),
                    mode="reflect")
    hp, wp = h + 2 * padding, w + 2 * padding
    h_out = (hp - k) // stride + 1
    w_out = (wp - k) // stride + 1

    # im2col: fold batch into M and the K*K taps + Cin into the contraction.
    m = n * h_out * w_out
    kc = k * k * cin
    patches = _im2col(x, k, stride, h_out, w_out)     # (M, Kc) bf16

    # ---- tile sizes -------------------------------------------------------
    tk = min(_round_up(kc, 128), 2048)                # lane-dense contraction
    kc_pad = _round_up(kc, tk)
    if m % 512 == 0:
        tm = 512
    elif m % 256 == 0:
        tm = 256
    elif m % 128 == 0:
        tm = 128
    else:
        tm = min(512, _round_up(m, 8))
    m_pad = _round_up(m, tm)
    cout128 = _round_up(cout, 128)                    # lane-dense output tiles
    tn = min(tn_pref, cout128)
    cout_pad = _round_up(cout128, tn)

    # Zero-padding is exact for the conv (padded rows/cols are discarded).
    patches = jnp.pad(patches, ((0, m_pad - m), (0, kc_pad - kc)))
    wmat = jnp.transpose(w_oihw, (2, 3, 1, 0)).reshape(kc, cout)
    wmat = jnp.pad(wmat.astype(compute_dtype),
                   ((0, kc_pad - kc), (0, cout_pad - cout)))
    b2 = jnp.pad(bias.astype(jnp.float32), (0, cout_pad - cout)).reshape(1, cout_pad)

    n_i, n_j, n_k = m_pad // tm, cout_pad // tn, kc_pad // tk

    isz = jnp.dtype(compute_dtype).itemsize
    out_isz = jnp.dtype(out_dtype).itemsize
    x_blk = tm * tk * isz
    w_blk = tk * tn * isz
    b_blk = 8 * max(tn, 128) * 4
    o_blk = tm * tn * out_isz
    acc_blk = tm * tn * 4

    # Grid order: keep the LARGER block resident across the inner grid axis so
    # the smaller one is the one that gets re-fetched from HBM.
    if w_blk >= x_blk:
        grid = (n_j, n_i, n_k)            # weights resident across M tiles
        x_map = lambda j, i, kk: (i, kk)
        w_map = lambda j, i, kk: (kk, j)
        b_map = lambda j, i, kk: (0, j)
        o_map = lambda j, i, kk: (i, j)
    else:
        grid = (n_i, n_j, n_k)            # activations resident across Cout tiles
        x_map = lambda i, j, kk: (i, kk)
        w_map = lambda i, j, kk: (kk, j)
        b_map = lambda i, j, kk: (0, j)
        o_map = lambda i, j, kk: (i, j)

    # VMEM budget from actual block bytes, capped per generation.
    vmem_limit = int(min(max(2 * (x_blk + w_blk + b_blk + o_blk) + acc_blk + (2 << 20),
                             8 << 20), vmem_budget))

    flops = 2 * m * kc * cout
    bytes_accessed = int((m_pad * kc_pad + kc_pad * cout_pad) * isz
                         + cout_pad * 4 + m_pad * cout_pad * out_isz)

    out = pl.pallas_call(
        _gemm_bias_lrelu_kernel(negative_slope),
        out_shape=jax.ShapeDtypeStruct((m_pad, cout_pad), out_dtype),
        grid=grid,
        in_specs=[
            pl.BlockSpec((tm, tk), x_map),
            pl.BlockSpec((tk, tn), w_map),
            pl.BlockSpec((1, tn), b_map),
        ],
        out_specs=pl.BlockSpec((tm, tn), o_map),
        scratch_shapes=[pltpu.VMEM((tm, tn), jnp.float32)],
        compiler_params=pltpu.CompilerParams(
            dimension_semantics=("parallel", "parallel", "arbitrary"),
            vmem_limit_bytes=vmem_limit,
        ),
        cost_estimate=pl.CostEstimate(flops=flops, transcendentals=0,
                                      bytes_accessed=bytes_accessed),
    )(patches, wmat, b2)

    return out[:m, :cout].reshape(n, h_out, w_out, cout)


# ----------------------------------------------------------------------------
# PyTorch-layout (NCHW) compatibility wrapper
# ----------------------------------------------------------------------------
def leaky_relu_conv2d(x_nchw, w_oihw, bias, *, stride=1, padding=0,
                      negative_slope=NEG_SLOPE, compute_dtype=jnp.bfloat16,
                      out_dtype=jnp.bfloat16):
    x = jnp.transpose(x_nchw, (0, 2, 3, 1))
    y = leaky_relu_conv2d_nhwc(x, w_oihw, bias, stride=stride, padding=padding,
                               negative_slope=negative_slope,
                               compute_dtype=compute_dtype, out_dtype=out_dtype)
    return jnp.transpose(y, (0, 3, 1, 2))


# ----------------------------------------------------------------------------
# SpectralNorm (sn=True): training-mode weight pre-transform, plain JAX.
# It only rescales the weight before the conv, so it lives outside the kernel.
# ----------------------------------------------------------------------------
def spectral_normalize(w_oihw, u, n_power_iterations=1, eps=1e-12):
    cout = w_oihw.shape[0]
    wm = w_oihw.reshape(cout, -1)
    _norm = lambda v: v / jnp.maximum(jnp.linalg.norm(v), eps)
    v = None
    for _ in range(n_power_iterations):
        v = _norm(wm.T @ u)
        u = _norm(wm @ v)
    sigma = u @ (wm @ v)
    return w_oihw / sigma, u


# ----------------------------------------------------------------------------
# Reference (plain JAX) and deterministic PyTorch-style init
# ----------------------------------------------------------------------------
def _reference(x_nchw, w_oihw, bias, *, stride, padding,
               negative_slope=NEG_SLOPE, compute_dtype=jnp.bfloat16):
    x = x_nchw
    if padding:
        x = jnp.pad(x, ((0, 0), (0, 0), (padding, padding), (padding, padding)),
                    mode="reflect")
    y = jax.lax.conv_general_dilated(
        x.astype(compute_dtype), w_oihw.astype(compute_dtype),
        window_strides=(stride, stride), padding="VALID",
        dimension_numbers=("NCHW", "OIHW", "NCHW"),
        preferred_element_type=jnp.float32)
    y = y + bias.astype(jnp.float32)[None, :, None, None]
    return jnp.where(y > 0, y, negative_slope * y)


def _init_conv(key, cin, cout, k):
    kw, kb = jax.random.split(key)
    w = 0.02 * jax.random.normal(kw, (cout, cin, k, k), jnp.float32)  # gaussian_weights_init
    bound = 1.0 / math.sqrt(cin * k * k)
    b = jax.random.uniform(kb, (cout,), jnp.float32, -bound, bound)   # PyTorch bias default
    return w, b


if __name__ == "__main__":
    key = jax.random.PRNGKey(0)
    kx, k1, k2 = jax.random.split(key, 3)

    N, C_IN, H, W = 2, 4, 16, 16
    x = jax.random.normal(kx, (N, C_IN, H, W), jnp.float32)

    # LeakyReLUConv2d(4, 128, kernel_size=3, stride=1, padding=1)
    w1, b1 = _init_conv(k1, C_IN, 128, 3)
    # LeakyReLUConv2d(128, 256, kernel_size=3, stride=2, padding=1)
    w2, b2 = _init_conv(k2, 128, 256, 3)

    # NHWC fast path: one transpose in / out, layers chained in bf16 NHWC with
    # no per-layer NCHW<->NHWC layout passes.
    x_nhwc = jnp.transpose(x, (0, 2, 3, 1))
    y1_nhwc = leaky_relu_conv2d_nhwc(x_nhwc, w1, b1, stride=1, padding=1)
    y2_nhwc = leaky_relu_conv2d_nhwc(y1_nhwc, w2, b2, stride=2, padding=1)
    y1 = jnp.transpose(y1_nhwc, (0, 3, 1, 2))
    y2 = jnp.transpose(y2_nhwc, (0, 3, 1, 2))
    y1, y2 = jax.block_until_ready((y1, y2))

    assert y1.shape == (N, 128, 16, 16), y1.shape
    assert y2.shape == (N, 256, 8, 8), y2.shape
    y1_f = y1.astype(jnp.float32)
    y2_f = y2.astype(jnp.float32)
    assert bool(jnp.all(jnp.isfinite(y1_f))) and bool(jnp.all(jnp.isfinite(y2_f)))

    # NCHW compatibility wrapper agrees with the NHWC fast path.
    y1_compat = leaky_relu_conv2d(x, w1, b1, stride=1, padding=1)
    assert bool(jnp.allclose(y1_compat.astype(jnp.float32), y1_f, atol=1e-5))

    # Reference check (bf16 inputs / f32 accumulate in both paths).
    r1 = _reference(x, w1, b1, stride=1, padding=1)
    r2 = _reference(y1_f, w2, b2, stride=2, padding=1)
    assert bool(jnp.allclose(y1_f, r1, rtol=2e-2, atol=2e-2)), \
        float(jnp.max(jnp.abs(y1_f - r1)))
    assert bool(jnp.allclose(y2_f, r2, rtol=2e-2, atol=2e-2)), \
        float(jnp.max(jnp.abs(y2_f - r2)))

    print("KERNEL_OK")
</pallas_src>

<mosaic_0001>
module attributes {stable_mosaic.version = 11 : i64} {
  func.func @kernel(%arg0: i32, %arg1: i32, %arg2: i32, %arg3: memref<512x128xbf16, #tpu.memory_space<vmem>>, %arg4: memref<128x128xbf16, #tpu.memory_space<vmem>>, %arg5: memref<1x128xf32, #tpu.memory_space<vmem>>, %arg6: memref<512x128xbf16, #tpu.memory_space<vmem>>, %arg7: memref<512x128xf32, #tpu.memory_space<vmem>>) attributes {dimension_semantics = [#tpu.dimension_semantics<parallel>, #tpu.dimension_semantics<parallel>, #tpu.dimension_semantics<arbitrary>], iteration_bounds = array<i64: 1, 1, 1>, scalar_prefetch = 0 : i64, scratch_operands = 1 : i64, tpu.core_type = #tpu.core_type<tc>, window_params = [{transform_indices = @transform_0, window_bounds = array<i64: 512, 128>}, {transform_indices = @transform_1, window_bounds = array<i64: 128, 128>}, {transform_indices = @transform_2, window_bounds = array<i64: 1, 128>}, {transform_indices = @transform_3, window_bounds = array<i64: 512, 128>}]} {
    %c0_i32 = arith.constant 0 : i32
    %0 = arith.cmpi eq, %arg2, %c0_i32 : i32
    %1 = arith.extui %0 : i1 to i32
    %c0_i32_0 = arith.constant 0 : i32
    %2 = arith.cmpi ne, %1, %c0_i32_0 : i32
    scf.if %2 {
      %c0_10 = arith.constant 0 : index
      %c0_11 = arith.constant 0 : index
      %12 = vector.load %arg5[%c0_10, %c0_11] : memref<1x128xf32, #tpu.memory_space<vmem>>, vector<1x128xf32>
      %13 = vector.shape_cast %12 : vector<1x128xf32> to vector<1x128xf32>
      %14 = vector.broadcast %13 : vector<1x128xf32> to vector<512x128xf32>
      %c0_12 = arith.constant 0 : index
      %c0_13 = arith.constant 0 : index
      %15 = vector.load %arg7[%c0_12, %c0_13] : memref<512x128xf32, #tpu.memory_space<vmem>>, vector<512x128xf32>
      tpu.vector_store %arg7[%c0_12, %c0_13], %14 {strides = array<i32>} : memref<512x128xf32, #tpu.memory_space<vmem>>, vector<512x128xf32>,
    } else {
    }
    %c0 = arith.constant 0 : index
    %c0_1 = arith.constant 0 : index
    %3 = vector.load %arg7[%c0, %c0_1] : memref<512x128xf32, #tpu.memory_space<vmem>>, vector<512x128xf32>
    %c0_2 = arith.constant 0 : index
    %c0_3 = arith.constant 0 : index
    %4 = vector.load %arg3[%c0_2, %c0_3] : memref<512x128xbf16, #tpu.memory_space<vmem>>, vector<512x128xbf16>
    %c0_4 = arith.constant 0 : index
    %c0_5 = arith.constant 0 : index
    %5 = vector.load %arg4[%c0_4, %c0_5] : memref<128x128xbf16, #tpu.memory_space<vmem>>, vector<128x128xbf16>
    %cst = arith.constant dense<0.000000e+00> : vector<512x128xf32>
    %6 = tpu.matmul %4, %5, %cst {dimension_numbers = #tpu.dot_dimension_numbers<[1], [0], [0], [1], [0, 0, 1, 1], [], []>} : vector<512x128xbf16>, vector<128x128xbf16>, vector<512x128xf32> -> vector<512x128xf32>
    %7 = arith.addf %3, %6 : vector<512x128xf32>
    %c0_6 = arith.constant 0 : index
    %c0_7 = arith.constant 0 : index
    %8 = vector.load %arg7[%c0_6, %c0_7] : memref<512x128xf32, #tpu.memory_space<vmem>>, vector<512x128xf32>
    tpu.vector_store %arg7[%c0_6, %c0_7], %7 {strides = array<i32>} : memref<512x128xf32, #tpu.memory_space<vmem>>, vector<512x128xf32>,
    %c0_i32_8 = arith.constant 0 : i32
    %9 = arith.cmpi eq, %arg2, %c0_i32_8 : i32
    %10 = arith.extui %9 : i1 to i32
    %c0_i32_9 = arith.constant 0 : i32
    %11 = arith.cmpi ne, %10, %c0_i32_9 : i32
    scf.if %11 {
      %c0_10 = arith.constant 0 : index
      %c0_11 = arith.constant 0 : index
      %12 = vector.load %arg7[%c0_10, %c0_11] : memref<512x128xf32, #tpu.memory_space<vmem>>, vector<512x128xf32>
      %cst_12 = arith.constant 0.00999999977 : f32
      %13 = vector.broadcast %cst_12 : f32 to vector<512x128xf32>
      %14 = arith.mulf %13, %12 : vector<512x128xf32>
      %15 = arith.maximumf %12, %14 : vector<512x128xf32>
      %16 = arith.truncf %15 : vector<512x128xf32> to vector<512x128xbf16>
      %c0_13 = arith.constant 0 : index
      %c0_14 = arith.constant 0 : index
      %17 = vector.load %arg6[%c0_13, %c0_14] : memref<512x128xbf16, #tpu.memory_space<vmem>>, vector<512x128xbf16>
      tpu.vector_store %arg6[%c0_13, %c0_14], %16 {strides = array<i32>} : memref<512x128xbf16, #tpu.memory_space<vmem>>, vector<512x128xbf16>,
    } else {
    }
    return
  }
  func.func @transform_0(%arg0: i32, %arg1: i32, %arg2: i32) -> (i32, i32) {
    %c0_i32 = arith.constant 0 : i32
    return %arg0, %arg2 : i32, i32
  }
  func.func @transform_1(%arg0: i32, %arg1: i32, %arg2: i32) -> (i32, i32) {
    %c0_i32 = arith.constant 0 : i32
    return %arg2, %arg1 : i32, i32
  }
  func.func @transform_2(%arg0: i32, %arg1: i32, %arg2: i32) -> (i32, i32) {
    %c0_i32 = arith.constant 0 : i32
    %c0_i32_0 = arith.constant 0 : i32
    return %c0_i32, %arg1 : i32, i32
  }
  func.func @transform_3(%arg0: i32, %arg1: i32, %arg2: i32) -> (i32, i32) {
    %c0_i32 = arith.constant 0 : i32
    return %arg0, %arg1 : i32, i32
  }
}

</mosaic_0001>

<bundles_post_ra>
// kernel: tpu_custom_call.1
= control target key start
LH: loop header
LB: loop body
LE: loop exit
PB: predicated region body
PF: predicated region fallthrough
CT: control target
= control target key end

     0   :  { %8 = vsyncpa [#allocation4], 0  ;;  %s2205_s0 = inlined_call_operand.hbm [shape: bf16[512,128], index: 0, kind: input, shape index: {}]   ;;  %s2206_s1 = inlined_call_operand.hbm [shape: bf16[128,128], index: 1, kind: input, shape index: {}]   ;;  %s2207_s2 = inlined_call_operand.vmem [shape: f32[1,128], index: 2, kind: input, shape index: {}]   ;;  %s2208_s3 = inlined_call_operand.hbm [shape: bf16[512,128], index: 3, kind: output, shape index: {}]  }
   0x1   :  { %9 = vsyncpa [#allocation7], 0 }
   0x2   :  { %10 = vsyncpa [#allocation5], 0  ;;  %s2066_s12 = smov [#allocation3]   ;;  %s1994_s16 = scalar_lea.hbm %s2205_s0, 4096 }
   0x3   :  { %s16_s13 = sshll.u32 %s2066_s12, 4  ;;  %p1995_p0 = scmp.ne.s32.totalorder %s2205_s0, %s1994_s16  ;;  %s17_s13 = int_to_ptr.vmem [resolvable:$true] %s16_s13 }
   0x4   :  { %p1998_p1 = scmp.lt.u32.totalorder %s1994_s16, %s2205_s0 }
   0x6   :  { %p2000_p2 = pnand %p1998_p1, %p1995_p0 }
   0x8   :  { %2003 = shalt.err (!%p2000_p2)
}
   0x9   :  { %s2004_s21 = scalar_lea.vmem %s17_s13, 4096  ;;  %p2009_p4 = scmp.lt.s32.totalorder %s17_s13, %s17_s13 }
   0xa   :  { %p2005_p3 = scmp.ne.s32.totalorder %s17_s13, %s2004_s21  ;;  %p2010_p5 = scmp.lt.s32.totalorder %s2004_s21, %s2004_s21 }
   0xc   :  { %p2011_p6 = por %p2010_p5, %p2009_p4 }
   0xe   :  { %p2012_p7 = pnand %p2011_p6, %p2005_p3 }
  0x10   :  { %2015 = shalt.err (!%p2012_p7)
}
  0x11   :  { %s2067_s22 = smov 64   ;;  %s2068_s23 = smov 4  }
  0x12   :  { %22 = dma.hbm_to_vmem [thread:$0]  %s2205_s0, 4096, %s17_s13, [#allocation4], %s2067_s22, %s2067_s22, %s2068_s23  }
  0x13   :  { %s2069_s26 = smov [#allocation6]   ;;  %s2016_s30 = scalar_lea.hbm %s2206_s1, 1024 }
  0x14   :  { %s28_s27 = sshll.u32 %s2069_s26, 4  ;;  %p2017_p8 = scmp.ne.s32.totalorder %s2206_s1, %s2016_s30  ;;  %s29_s27 = int_to_ptr.vmem [resolvable:$true] %s28_s27 }
  0x15   :  { %p2020_p9 = scmp.lt.u32.totalorder %s2016_s30, %s2206_s1 }
  0x17   :  { %p2022_p10 = pnand %p2020_p9, %p2017_p8 }
  0x19   :  { %2025 = shalt.err (!%p2022_p10)
}
  0x1a   :  { %s2026_s8 = scalar_lea.vmem %s29_s27, 1024  ;;  %p2031_p12 = scmp.lt.s32.totalorder %s29_s27, %s29_s27 }
  0x1b   :  { %p2027_p11 = scmp.ne.s32.totalorder %s29_s27, %s2026_s8  ;;  %p2032_p13 = scmp.lt.s32.totalorder %s2026_s8, %s2026_s8 }
  0x1d   :  { %p2033_p0 = por %p2032_p13, %p2031_p12 }
  0x1f   :  { %p2034_p1 = pnand %p2033_p0, %p2027_p11 }
  0x21   :  { %2037 = shalt.err (!%p2034_p1)
}
  0x22   :  { %34 = dma.hbm_to_vmem [thread:$0]  %s2206_s1, 1024, %s29_s27, [#allocation7], %s2067_s22, %s2067_s22, %s2068_s23  }
  0x23   :  { %2060 = dma.done.wait [#allocation4], 4096  }
  0x24   :  { %2061 = vsyncadd [#allocation4], 4294963200 }
  0x25   :  { %2062 = dma.done.wait [#allocation7], 1024  }
  0x26   :  { %2063 = vsyncadd [#allocation7], 4294966272  ;;  %v1954_v0 = vld [vmem:[#allocation6] sm:$0xff]   ;;  %v1955_v1 = vld [vmem:[#allocation6 + $0x8] sm:$0xff]  }
  0x27   :  { %1853 = vmatprep.subr.bf16.mxu0 %v1954_v0  ;;  %1933 = vmatprep.subr.bf16.mxu1 %v1954_v0  ;;  %v1956_v2 = vld [vmem:[#allocation6 + $0x10] sm:$0xff]   ;;  %v1957_v3 = vld [vmem:[#allocation6 + $0x18] sm:$0xff]   ;;  %v1962_v4 = vld [vmem:[#allocation3] sm:$0xff]  }
  0x28   :  { %1854 = vmatpush3.bf16.msra.mxu0 %v1954_v0  ;;  %1941 = vmatpush3.bf16.msra.mxu1 %v1954_v0  ;;  %v1963_v5 = vld [vmem:[#allocation3 + $0x80] sm:$0xff]   ;;  %v1959_v7 = vld [vmem:[#allocation6 + $0x28] sm:$0xff]   ;;  %v1960_v8 = vld [vmem:[#allocation6 + $0x30] sm:$0xff]  }
  0x29   :  { %1855 = vmatprep.subr.bf16.mxu0 %v1955_v1  ;;  %1934 = vmatprep.subr.bf16.mxu1 %v1955_v1  ;;  %v1958_v6 = vld [vmem:[#allocation6 + $0x20] sm:$0xff]   ;;  %v1961_v9 = vld [vmem:[#allocation6 + $0x38] sm:$0xff]   ;;  %v1964_v10 = vld [vmem:[#allocation3 + $0x8] sm:$0xff]  }
  0x2a   :  { %1869 = vmatprep.mubr.bf16.mxu0 %v1962_v4  ;;  %1901 = vmatprep.mubr.bf16.mxu1 %v1963_v5  ;;  %v1965_v11 = vld [vmem:[#allocation3 + $0x88] sm:$0xff]   ;;  %v1966_v12 = vld [vmem:[#allocation3 + $0x10] sm:$0xff]   ;;  %v1968_v14 = vld [vmem:[#allocation3 + $0x18] sm:$0xff]  }
  0x2b   :  { %v1967_v13 = vld [vmem:[#allocation3 + $0x90] sm:$0xff]   ;;  %v1969_v15 = vld [vmem:[#allocation3 + $0x98] sm:$0xff]   ;;  %v1970_v16 = vld [vmem:[#allocation3 + $0x20] sm:$0xff]  }
  0x2c   :  { %1856 = vmatpush3.bf16.msra.mxu0 %v1955_v1  ;;  %1942 = vmatpush3.bf16.msra.mxu1 %v1955_v1  ;;  %v1971_v17 = vld [vmem:[#allocation3 + $0xa0] sm:$0xff]   ;;  %v1972_v18 = vld [vmem:[#allocation3 + $0x28] sm:$0xff]   ;;  %v1974_v20 = vld [vmem:[#allocation3 + $0x30] sm:$0xff]  }
  0x2d   :  { %1857 = vmatprep.subr.bf16.mxu0 %v1956_v2  ;;  %1935 = vmatprep.subr.bf16.mxu1 %v1956_v2  ;;  %v1973_v19 = vld [vmem:[#allocation3 + $0xa8] sm:$0xff]   ;;  %v1975_v21 = vld [vmem:[#allocation3 + $0xb0] sm:$0xff]   ;;  %v1976_v22 = vld [vmem:[#allocation3 + $0x38] sm:$0xff]  }
  0x2e   :  { %v1977_v23 = vld [vmem:[#allocation3 + $0xb8] sm:$0xff]   ;;  %v1978_v24 = vld [vmem:[#allocation3 + $0x40] sm:$0xff]   ;;  %v1980_v26 = vld [vmem:[#allocation3 + $0x48] sm:$0xff]  }
  0x2f   :  { %v1979_v25 = vld [vmem:[#allocation3 + $0xc0] sm:$0xff]   ;;  %v1981_v27 = vld [vmem:[#allocation3 + $0xc8] sm:$0xff]   ;;  %v1982_v28 = vld [vmem:[#allocation3 + $0x50] sm:$0xff]  }
  0x30   :  { %1858 = vmatpush3.bf16.msra.mxu0 %v1956_v2  ;;  %1943 = vmatpush3.bf16.msra.mxu1 %v1956_v2  ;;  %v1983_v29 = vld [vmem:[#allocation3 + $0xd0] sm:$0xff]   ;;  %v1984_v30 = vld [vmem:[#allocation3 + $0x58] sm:$0xff]   ;;  %v1986_v32 = vld [vmem:[#allocation3 + $0x60] sm:$0xff]  }
  0x31   :  { %1859 = vmatprep.subr.bf16.mxu0 %v1957_v3  ;;  %1936 = vmatprep.subr.bf16.mxu1 %v1957_v3  ;;  %v1985_v31 = vld [vmem:[#allocation3 + $0xd8] sm:$0xff]   ;;  %v1987_v33 = vld [vmem:[#allocation3 + $0xe0] sm:$0xff]   ;;  %v1988_v34 = vld [vmem:[#allocation3 + $0x68] sm:$0xff]  }
  0x32   :  { %v1989_v35 = vld [vmem:[#allocation3 + $0xe8] sm:$0xff]   ;;  %v1990_v36 = vld [vmem:[#allocation3 + $0x70] sm:$0xff]   ;;  %v1992_v38 = vld [vmem:[#allocation3 + $0x78] sm:$0xff]  }
  0x33   :  { %v1991_v37 = vld [vmem:[#allocation3 + $0xf0] sm:$0xff]   ;;  %v1993_v39 = vld [vmem:[#allocation3 + $0xf8] sm:$0xff]   ;;  %v2124_v40 = vld [vmem:[%s2207_s2] ss:$0 sm:$0xff]  ;;  %s2070_s2 = smov [#allocation8]  }
  0x34   :  { %1860 = vmatpush3.bf16.msra.mxu0 %v1957_v3  ;;  %1944 = vmatpush3.bf16.msra.mxu1 %v1957_v3  ;;  %s1440_s11 = sshll.u32 %s2070_s2, 4  ;;  %s1441_s11 = int_to_ptr.vmem [resolvable:$true] %s1440_s11 }
  0x35   :  { %1861 = vmatprep.subr.bf16.mxu0 %v1958_v6  ;;  %1937 = vmatprep.subr.bf16.mxu1 %v1958_v6  ;;  %s2038_s12 = scalar_lea.vmem %s1441_s11, 4096  ;;  %p2043_p3 = scmp.lt.s32.totalorder %s1441_s11, %s1441_s11 }
  0x36   :  { %p2039_p2 = scmp.ne.s32.totalorder %s1441_s11, %s2038_s12  ;;  %p2044_p4 = scmp.lt.s32.totalorder %s2038_s12, %s2038_s12 }
  0x38   :  { %1862 = vmatpush3.bf16.msra.mxu0 %v1958_v6  ;;  %1945 = vmatpush3.bf16.msra.mxu1 %v1958_v6  ;;  %p2045_p5 = por %p2044_p4, %p2043_p3 }
  0x39   :  { %1863 = vmatprep.subr.bf16.mxu0 %v1959_v7  ;;  %1938 = vmatprep.subr.bf16.mxu1 %v1959_v7 }
  0x3a   :  { %p2046_p6 = pnand %p2045_p5, %p2039_p2 }
  0x3c   :  { %1864 = vmatpush3.bf16.msra.mxu0 %v1959_v7  ;;  %1946 = vmatpush3.bf16.msra.mxu1 %v1959_v7 }
  0x3d   :  { %1865 = vmatprep.subr.bf16.mxu0 %v1960_v8  ;;  %1939 = vmatprep.subr.bf16.mxu1 %v1960_v8 }
  0x40   :  { %1866 = vmatpush3.bf16.msra.mxu0 %v1960_v8  ;;  %1947 = vmatpush3.bf16.msra.mxu1 %v1960_v8 }
  0x41   :  { %1867 = vmatprep.subr.bf16.mxu0 %v1961_v9  ;;  %1940 = vmatprep.subr.bf16.mxu1 %v1961_v9 }
  0x44   :  { %1868 = vmatpush3.bf16.msra.mxu0 %v1961_v9  ;;  %1948 = vmatpush3.bf16.msra.mxu1 %v1961_v9 }
  0x47   :  { %1870 = vmatmul.mubr.bf16.vlgmr.msra.gmra.mrb[0].mxu0 %v1964_v10  ;;  %1902 = vmatmul.mubr.bf16.vlgmr.msra.gmra.mrb[0].mxu1 %v1965_v11 }
  0x48   :  { %1873 = vmatprep.mubr.bf16.mxu0 %v1966_v12  ;;  %1905 = vmatprep.mubr.bf16.mxu1 %v1967_v13 }
  0x4f   :  { %1874 = vmatmul.mubr.bf16.gmra.mrb[4].mxu0 %v1968_v14  ;;  %1906 = vmatmul.mubr.bf16.gmra.mrb[4].mxu1 %v1969_v15 }
  0x50   :  { %1877 = vmatprep.mubr.bf16.mxu0 %v1970_v16  ;;  %1909 = vmatprep.mubr.bf16.mxu1 %v1971_v17 }
  0x57   :  { %1878 = vmatmul.mubr.bf16.gmra.mrb[8].mxu0 %v1972_v18  ;;  %1910 = vmatmul.mubr.bf16.gmra.mrb[8].mxu1 %v1973_v19 }
  0x58   :  { %1881 = vmatprep.mubr.bf16.mxu0 %v1974_v20  ;;  %1913 = vmatprep.mubr.bf16.mxu1 %v1975_v21 }
  0x5f   :  { %1882 = vmatmul.mubr.bf16.gmra.mrb[12].mxu0 %v1976_v22  ;;  %1914 = vmatmul.mubr.bf16.gmra.mrb[12].mxu1 %v1977_v23 }
  0x60   :  { %1885 = vmatprep.mubr.bf16.mxu0 %v1978_v24  ;;  %1917 = vmatprep.mubr.bf16.mxu1 %v1979_v25 }
  0x67   :  { %1886 = vmatmul.mubr.bf16.gmra.mrb[16].mxu0 %v1980_v26  ;;  %1918 = vmatmul.mubr.bf16.gmra.mrb[16].mxu1 %v1981_v27 }
  0x68   :  { %1889 = vmatprep.mubr.bf16.mxu0 %v1982_v28  ;;  %1921 = vmatprep.mubr.bf16.mxu1 %v1983_v29 }
  0x6f   :  { %1890 = vmatmul.mubr.bf16.gmra.mrb[20].mxu0 %v1984_v30  ;;  %1922 = vmatmul.mubr.bf16.gmra.mrb[20].mxu1 %v1985_v31 }
  0x70   :  { %1893 = vmatprep.mubr.bf16.mxu0 %v1986_v32  ;;  %1925 = vmatprep.mubr.bf16.mxu1 %v1987_v33 }
  0x77   :  { %1894 = vmatmul.mubr.bf16.gmra.mrb[24].mxu0 %v1988_v34  ;;  %1926 = vmatmul.mubr.bf16.gmra.mrb[24].mxu1 %v1989_v35 }
  0x78   :  { %1897 = vmatprep.mubr.bf16.mxu0 %v1990_v36  ;;  %1929 = vmatprep.mubr.bf16.mxu1 %v1991_v37 }
  0x7f   :  { %1898 = vmatmul.mubr.bf16.gmra.mrb[28].mxu0 %v1992_v38  ;;  %1930 = vmatmul.mubr.bf16.gmra.mrb[28].mxu1 %v1993_v39 }
 0x11a   :  { %v1871_v41 = vpop.f32.mrb[0].mxu0  ;;  %v1903_v42 = vpop.f32.mrb[0].mxu1 }
 0x11b   :  { %v794_v43 = vadd.f32 %v1871_v41, %v2124_v40  ;;  %v826_v44 = vadd.f32 %v1903_v42, %v2124_v40  ;;  %v537_v45 = vpop.f32.mrb[1].mxu0  ;;  %v665_v46 = vpop.f32.mrb[1].mxu1 }
 0x11c   :  { %v792_v47 = vadd.f32 %v2124_v40, %v537_v45  ;;  %v824_v48 = vadd.f32 %v2124_v40, %v665_v46  ;;  %v1872_v49 = vpop.f32.mrb[2].mxu0  ;;  %v1904_v50 = vpop.f32.mrb[2].mxu1 }
 0x11d   :  { %v989_v51 = vmul.f32 0.01, %v794_v43  ;;  %v1021_v52 = vmul.f32 0.01, %v826_v44  ;;  %v795_v53 = vadd.f32 %v1872_v49, %v2124_v40  ;;  %v827_v54 = vadd.f32 %v1904_v50, %v2124_v40  ;;  %v540_v55 = vpop.f32.mrb[3].mxu0  ;;  %v668_v56 = vpop.f32.mrb[3].mxu1 }
 0x11e   :  { %v987_v57 = vmul.f32 0.01, %v792_v47  ;;  %v1019_v58 = vmul.f32 0.01, %v824_v48  ;;  %v793_v59 = vadd.f32 %v2124_v40, %v540_v55  ;;  %v825_v60 = vadd.f32 %v2124_v40, %v668_v56 }
 0x11f   :  { %v990_v61 = vmul.f32 0.01, %v795_v53  ;;  %v1022_v62 = vmul.f32 0.01, %v827_v54  ;;  %v1053_v1 = vmax.f32 %v794_v43, %v989_v51  ;;  %v1085_v2 = vmax.f32 %v826_v44, %v1021_v52 }
 0x120   :  { %v988_v63 = vmul.f32 0.01, %v793_v59  ;;  %v1020_v0 = vmul.f32 0.01, %v825_v60  ;;  %v1051_v5 = vmax.f32 %v792_v47, %v987_v57  ;;  %v1083_v6 = vmax.f32 %v824_v48, %v1019_v58 }
 0x121   :  { %v1054_v3 = vmax.f32 %v795_v53, %v990_v61  ;;  %v1086_v4 = vmax.f32 %v827_v54, %v1022_v62 }
 0x122   :  { %v1052_v7 = vmax.f32 %v793_v59, %v988_v63  ;;  %v1084_v8 = vmax.f32 %v825_v60, %v1020_v0  ;;  %v1875_v9 = vpop.f32.mrb[4].mxu0  ;;  %v1907_v10 = vpop.f32.mrb[4].mxu1 }
 0x123   :  { %v1630_v11 = vpack.c.bf16 %v1054_v3, %v1053_v1  ;;  %v1710_v12 = vpack.c.bf16 %v1086_v4, %v1085_v2  ;;  %v798_v13 = vadd.f32 %v1875_v9, %v2124_v40  ;;  %v830_v14 = vadd.f32 %v1907_v10, %v2124_v40  ;;  %v553_v15 = vpop.f32.mrb[5].mxu0  ;;  %v681_v16 = vpop.f32.mrb[5].mxu1 }
 0x124   :  { %v1625_v17 = vpack.c.bf16 %v1052_v7, %v1051_v5  ;;  %v1705_v18 = vpack.c.bf16 %v1084_v8, %v1083_v6  ;;  %v796_v19 = vadd.f32 %v2124_v40, %v553_v15  ;;  %v828_v20 = vadd.f32 %v2124_v40, %v681_v16  ;;  %v1876_v21 = vpop.f32.mrb[6].mxu0  ;;  %v1908_v22 = vpop.f32.mrb[6].mxu1 }
 0x125   :  { %1782 = vst [vmem:[#allocation8 + $0x8] sm:$0xff] %v1630_v11   ;;  %1798 = vst [vmem:[#allocation8 + $0x88] sm:$0xff] %v1710_v12   ;;  %v993_v23 = vmul.f32 0.01, %v798_v13  ;;  %v1025_v24 = vmul.f32 0.01, %v830_v14  ;;  %v799_v25 = vadd.f32 %v1876_v21, %v2124_v40  ;;  %v831_v26 = vadd.f32 %v1908_v22, %v2124_v40 }
 0x126   :  { %v556_v27 = vpop.f32.mrb[7].mxu0  ;;  %v684_v28 = vpop.f32.mrb[7].mxu1  ;;  %1626 = vst [vmem:[#allocation8] sm:$0xff] %v1625_v17   ;;  %1797 = vst [vmem:[#allocation8 + $0x80] sm:$0xff] %v1705_v18   ;;  %v991_v29 = vmul.f32 0.01, %v796_v19 }
 0x127   :  { %v1023_v30 = vmul.f32 0.01, %v828_v20  ;;  %v797_v31 = vadd.f32 %v2124_v40, %v556_v27  ;;  %v829_v32 = vadd.f32 %v2124_v40, %v684_v28  ;;  %v994_v33 = vmul.f32 0.01, %v799_v25 }
 0x128   :  { %v1026_v34 = vmul.f32 0.01, %v831_v26  ;;  %v1057_v37 = vmax.f32 %v798_v13, %v993_v23  ;;  %v1089_v38 = vmax.f32 %v830_v14, %v1025_v24  ;;  %v1055_v42 = vmax.f32 %v796_v19, %v991_v29 }
 0x129   :  { %v992_v35 = vmul.f32 0.01, %v797_v31  ;;  %v1024_v36 = vmul.f32 0.01, %v829_v32  ;;  %v1058_v39 = vmax.f32 %v799_v25, %v994_v33  ;;  %v1087_v43 = vmax.f32 %v828_v20, %v1023_v30 }
 0x12a   :  { %v1090_v41 = vmax.f32 %v831_v26, %v1026_v34  ;;  %v1879_v46 = vpop.f32.mrb[8].mxu0  ;;  %v1911_v47 = vpop.f32.mrb[8].mxu1 }
 0x12b   :  { %v1056_v44 = vmax.f32 %v797_v31, %v992_v35  ;;  %v1088_v45 = vmax.f32 %v829_v32, %v1024_v36  ;;  %v1640_v48 = vpack.c.bf16 %v1058_v39, %v1057_v37  ;;  %v802_v50 = vadd.f32 %v1879_v46, %v2124_v40  ;;  %v569_v52 = vpop.f32.mrb[9].mxu0  ;;  %v697_v53 = vpop.f32.mrb[9].mxu1 }
 0x12c   :  { %v1720_v49 = vpack.c.bf16 %v1090_v41, %v1089_v38  ;;  %v834_v51 = vadd.f32 %v1911_v47, %v2124_v40  ;;  %v800_v56 = vadd.f32 %v2124_v40, %v569_v52  ;;  %v832_v57 = vadd.f32 %v2124_v40, %v697_v53  ;;  %v1880_v58 = vpop.f32.mrb[10].mxu0  ;;  %v1912_v59 = vpop.f32.mrb[10].mxu1 }
 0x12d   :  { %v1635_v54 = vpack.c.bf16 %v1056_v44, %v1055_v42  ;;  %v1715_v55 = vpack.c.bf16 %v1088_v45, %v1087_v43  ;;  %1784 = vst [vmem:[#allocation8 + $0x18] sm:$0xff] %v1640_v48   ;;  %v997_v60 = vmul.f32 0.01, %v802_v50  ;;  %v803_v62 = vadd.f32 %v1880_v58, %v2124_v40  ;;  %v572_v0 = vpop.f32.mrb[11].mxu0  ;;  %v700_v1 = vpop.f32.mrb[11].mxu1 }
 0x12e   :  { %1800 = vst [vmem:[#allocation8 + $0x98] sm:$0xff] %v1720_v49   ;;  %v1029_v61 = vmul.f32 0.01, %v834_v51  ;;  %v835_v63 = vadd.f32 %v1912_v59, %v2124_v40  ;;  %v995_v2 = vmul.f32 0.01, %v800_v56  ;;  %v801_v4 = vadd.f32 %v2124_v40, %v572_v0 }
 0x12f   :  { %1783 = vst [vmem:[#allocation8 + $0x10] sm:$0xff] %v1635_v54   ;;  %1799 = vst [vmem:[#allocation8 + $0x90] sm:$0xff] %v1715_v55   ;;  %v1027_v3 = vmul.f32 0.01, %v832_v57  ;;  %v833_v5 = vadd.f32 %v2124_v40, %v700_v1  ;;  %v998_v6 = vmul.f32 0.01, %v803_v62  ;;  %v1061_v10 = vmax.f32 %v802_v50, %v997_v60 }
 0x130   :  { %v1030_v7 = vmul.f32 0.01, %v835_v63  ;;  %v996_v8 = vmul.f32 0.01, %v801_v4  ;;  %v1093_v11 = vmax.f32 %v834_v51, %v1029_v61  ;;  %v1059_v14 = vmax.f32 %v800_v56, %v995_v2 }
 0x131   :  { %v1028_v9 = vmul.f32 0.01, %v833_v5  ;;  %v1062_v12 = vmax.f32 %v803_v62, %v998_v6  ;;  %v1091_v15 = vmax.f32 %v832_v57, %v1027_v3 }
 0x132   :  { %v1094_v13 = vmax.f32 %v835_v63, %v1030_v7  ;;  %v1060_v16 = vmax.f32 %v801_v4, %v996_v8  ;;  %v1883_v18 = vpop.f32.mrb[12].mxu0  ;;  %v1915_v19 = vpop.f32.mrb[12].mxu1 }
 0x133   :  { %v1092_v17 = vmax.f32 %v833_v5, %v1028_v9  ;;  %v1650_v20 = vpack.c.bf16 %v1062_v12, %v1061_v10  ;;  %v806_v22 = vadd.f32 %v1883_v18, %v2124_v40  ;;  %v838_v23 = vadd.f32 %v1915_v19, %v2124_v40  ;;  %v585_v24 = vpop.f32.mrb[13].mxu0  ;;  %v713_v25 = vpop.f32.mrb[13].mxu1 }
 0x134   :  { %v1730_v21 = vpack.c.bf16 %v1094_v13, %v1093_v11  ;;  %v1645_v26 = vpack.c.bf16 %v1060_v16, %v1059_v14  ;;  %v804_v28 = vadd.f32 %v2124_v40, %v585_v24  ;;  %v836_v29 = vadd.f32 %v2124_v40, %v713_v25  ;;  %v1884_v30 = vpop.f32.mrb[14].mxu0  ;;  %v1916_v31 = vpop.f32.mrb[14].mxu1 }
 0x135   :  { %v1725_v27 = vpack.c.bf16 %v1092_v17, %v1091_v15  ;;  %1786 = vst [vmem:[#allocation8 + $0x28] sm:$0xff] %v1650_v20   ;;  %v1001_v32 = vmul.f32 0.01, %v806_v22  ;;  %v1033_v33 = vmul.f32 0.01, %v838_v23  ;;  %v807_v34 = vadd.f32 %v1884_v30, %v2124_v40  ;;  %v588_v36 = vpop.f32.mrb[15].mxu0 }
 0x136   :  { %1802 = vst [vmem:[#allocation8 + $0xa8] sm:$0xff] %v1730_v21   ;;  %v839_v35 = vadd.f32 %v1916_v31, %v2124_v40  ;;  %v716_v37 = vpop.f32.mrb[15].mxu1  ;;  %1785 = vst [vmem:[#allocation8 + $0x20] sm:$0xff] %v1645_v26   ;;  %v999_v38 = vmul.f32 0.01, %v804_v28  ;;  %v805_v41 = vadd.f32 %v2124_v40, %v588_v36 }
 0x137   :  { %1801 = vst [vmem:[#allocation8 + $0xa0] sm:$0xff] %v1725_v27   ;;  %v1031_v39 = vmul.f32 0.01, %v836_v29  ;;  %v837_v42 = vadd.f32 %v2124_v40, %v716_v37  ;;  %v1002_v43 = vmul.f32 0.01, %v807_v34  ;;  %v1065_v47 = vmax.f32 %v806_v22, %v1001_v32 }
 0x138   :  { %v1034_v44 = vmul.f32 0.01, %v839_v35  ;;  %v1000_v45 = vmul.f32 0.01, %v805_v41  ;;  %v1097_v48 = vmax.f32 %v838_v23, %v1033_v33  ;;  %v1063_v51 = vmax.f32 %v804_v28, %v999_v38 }
 0x139   :  { %v1032_v46 = vmul.f32 0.01, %v837_v42  ;;  %v1066_v49 = vmax.f32 %v807_v34, %v1002_v43  ;;  %v1095_v52 = vmax.f32 %v836_v29, %v1031_v39 }
 0x13a   :  { %v1098_v50 = vmax.f32 %v839_v35, %v1034_v44  ;;  %v1064_v53 = vmax.f32 %v805_v41, %v1000_v45  ;;  %v1887_v55 = vpop.f32.mrb[16].mxu0  ;;  %v1919_v56 = vpop.f32.mrb[16].mxu1 }
 0x13b   :  { %v1096_v54 = vmax.f32 %v837_v42, %v1032_v46  ;;  %v1660_v57 = vpack.c.bf16 %v1066_v49, %v1065_v47  ;;  %v810_v59 = vadd.f32 %v1887_v55, %v2124_v40  ;;  %v842_v60 = vadd.f32 %v1919_v56, %v2124_v40  ;;  %v601_v61 = vpop.f32.mrb[17].mxu0  ;;  %v729_v62 = vpop.f32.mrb[17].mxu1 }
 0x13c   :  { %v1740_v58 = vpack.c.bf16 %v1098_v50, %v1097_v48  ;;  %v1655_v63 = vpack.c.bf16 %v1064_v53, %v1063_v51  ;;  %v808_v1 = vadd.f32 %v2124_v40, %v601_v61  ;;  %v840_v2 = vadd.f32 %v2124_v40, %v729_v62  ;;  %v1888_v3 = vpop.f32.mrb[18].mxu0  ;;  %v1920_v4 = vpop.f32.mrb[18].mxu1 }
 0x13d   :  { %v1735_v0 = vpack.c.bf16 %v1096_v54, %v1095_v52  ;;  %1788 = vst [vmem:[#allocation8 + $0x38] sm:$0xff] %v1660_v57   ;;  %v1005_v5 = vmul.f32 0.01, %v810_v59  ;;  %v1037_v6 = vmul.f32 0.01, %v842_v60  ;;  %v811_v7 = vadd.f32 %v1888_v3, %v2124_v40  ;;  %v604_v9 = vpop.f32.mrb[19].mxu0 }
 0x13e   :  { %1804 = vst [vmem:[#allocation8 + $0xb8] sm:$0xff] %v1740_v58   ;;  %v843_v8 = vadd.f32 %v1920_v4, %v2124_v40  ;;  %v732_v10 = vpop.f32.mrb[19].mxu1  ;;  %1787 = vst [vmem:[#allocation8 + $0x30] sm:$0xff] %v1655_v63   ;;  %v1003_v11 = vmul.f32 0.01, %v808_v1  ;;  %v809_v13 = vadd.f32 %v2124_v40, %v604_v9 }
 0x13f   :  { %1803 = vst [vmem:[#allocation8 + $0xb0] sm:$0xff] %v1735_v0   ;;  %v1035_v12 = vmul.f32 0.01, %v840_v2  ;;  %v841_v14 = vadd.f32 %v2124_v40, %v732_v10  ;;  %v1006_v15 = vmul.f32 0.01, %v811_v7  ;;  %v1069_v19 = vmax.f32 %v810_v59, %v1005_v5 }
 0x140   :  { %v1038_v16 = vmul.f32 0.01, %v843_v8  ;;  %v1004_v17 = vmul.f32 0.01, %v809_v13  ;;  %v1101_v20 = vmax.f32 %v842_v60, %v1037_v6  ;;  %v1067_v23 = vmax.f32 %v808_v1, %v1003_v11 }
 0x141   :  { %v1036_v18 = vmul.f32 0.01, %v841_v14  ;;  %v1070_v21 = vmax.f32 %v811_v7, %v1006_v15  ;;  %v1099_v24 = vmax.f32 %v840_v2, %v1035_v12 }
 0x142   :  { %v1102_v22 = vmax.f32 %v843_v8, %v1038_v16  ;;  %v1068_v25 = vmax.f32 %v809_v13, %v1004_v17  ;;  %v1891_v27 = vpop.f32.mrb[20].mxu0  ;;  %v1923_v28 = vpop.f32.mrb[20].mxu1 }
 0x143   :  { %v1100_v26 = vmax.f32 %v841_v14, %v1036_v18  ;;  %v1670_v29 = vpack.c.bf16 %v1070_v21, %v1069_v19  ;;  %v814_v31 = vadd.f32 %v1891_v27, %v2124_v40  ;;  %v846_v32 = vadd.f32 %v1923_v28, %v2124_v40  ;;  %v617_v33 = vpop.f32.mrb[21].mxu0  ;;  %v745_v34 = vpop.f32.mrb[21].mxu1 }
 0x144   :  { %v1750_v30 = vpack.c.bf16 %v1102_v22, %v1101_v20  ;;  %v1665_v35 = vpack.c.bf16 %v1068_v25, %v1067_v23  ;;  %v812_v37 = vadd.f32 %v2124_v40, %v617_v33  ;;  %v844_v38 = vadd.f32 %v2124_v40, %v745_v34  ;;  %v1892_v39 = vpop.f32.mrb[22].mxu0  ;;  %v1924_v41 = vpop.f32.mrb[22].mxu1 }
 0x145   :  { %v1745_v36 = vpack.c.bf16 %v1100_v26, %v1099_v24  ;;  %1790 = vst [vmem:[#allocation8 + $0x48] sm:$0xff] %v1670_v29   ;;  %v1009_v42 = vmul.f32 0.01, %v814_v31  ;;  %v1041_v43 = vmul.f32 0.01, %v846_v32  ;;  %v815_v44 = vadd.f32 %v1892_v39, %v2124_v40  ;;  %v620_v46 = vpop.f32.mrb[23].mxu0 }
 0x146   :  { %1806 = vst [vmem:[#allocation8 + $0xc8] sm:$0xff] %v1750_v30   ;;  %v847_v45 = vadd.f32 %v1924_v41, %v2124_v40  ;;  %v748_v47 = vpop.f32.mrb[23].mxu1  ;;  %1789 = vst [vmem:[#allocation8 + $0x40] sm:$0xff] %v1665_v35   ;;  %v1007_v48 = vmul.f32 0.01, %v812_v37  ;;  %v813_v50 = vadd.f32 %v2124_v40, %v620_v46 }
 0x147   :  { %1805 = vst [vmem:[#allocation8 + $0xc0] sm:$0xff] %v1745_v36   ;;  %v1039_v49 = vmul.f32 0.01, %v844_v38  ;;  %v845_v51 = vadd.f32 %v2124_v40, %v748_v47  ;;  %v1010_v52 = vmul.f32 0.01, %v815_v44  ;;  %v1073_v56 = vmax.f32 %v814_v31, %v1009_v42 }
 0x148   :  { %v1042_v53 = vmul.f32 0.01, %v847_v45  ;;  %v1008_v54 = vmul.f32 0.01, %v813_v50  ;;  %v1105_v57 = vmax.f32 %v846_v32, %v1041_v43  ;;  %v1071_v60 = vmax.f32 %v812_v37, %v1007_v48 }
 0x149   :  { %v1040_v55 = vmul.f32 0.01, %v845_v51  ;;  %v1074_v58 = vmax.f32 %v815_v44, %v1010_v52  ;;  %v1103_v61 = vmax.f32 %v844_v38, %v1039_v49 }
 0x14a   :  { %v1106_v59 = vmax.f32 %v847_v45, %v1042_v53  ;;  %v1072_v62 = vmax.f32 %v813_v50, %v1008_v54  ;;  %v1895_v0 = vpop.f32.mrb[24].mxu0  ;;  %v1927_v1 = vpop.f32.mrb[24].mxu1 }
 0x14b   :  { %v1104_v63 = vmax.f32 %v845_v51, %v1040_v55  ;;  %v1680_v2 = vpack.c.bf16 %v1074_v58, %v1073_v56  ;;  %v818_v4 = vadd.f32 %v1895_v0, %v2124_v40  ;;  %v850_v5 = vadd.f32 %v1927_v1, %v2124_v40  ;;  %v633_v6 = vpop.f32.mrb[25].mxu0  ;;  %v761_v7 = vpop.f32.mrb[25].mxu1 }
 0x14c   :  { %v1760_v3 = vpack.c.bf16 %v1106_v59, %v1105_v57  ;;  %v1675_v8 = vpack.c.bf16 %v1072_v62, %v1071_v60  ;;  %v816_v10 = vadd.f32 %v2124_v40, %v633_v6  ;;  %v848_v11 = vadd.f32 %v2124_v40, %v761_v7  ;;  %v1896_v12 = vpop.f32.mrb[26].mxu0  ;;  %v1928_v13 = vpop.f32.mrb[26].mxu1 }
 0x14d   :  { %v1755_v9 = vpack.c.bf16 %v1104_v63, %v1103_v61  ;;  %1792 = vst [vmem:[#allocation8 + $0x58] sm:$0xff] %v1680_v2   ;;  %v1013_v14 = vmul.f32 0.01, %v818_v4  ;;  %v1045_v15 = vmul.f32 0.01, %v850_v5  ;;  %v819_v16 = vadd.f32 %v1896_v12, %v2124_v40  ;;  %v636_v18 = vpop.f32.mrb[27].mxu0 }
 0x14e   :  { %1808 = vst [vmem:[#allocation8 + $0xd8] sm:$0xff] %v1760_v3   ;;  %v851_v17 = vadd.f32 %v1928_v13, %v2124_v40  ;;  %v764_v19 = vpop.f32.mrb[27].mxu1  ;;  %1791 = vst [vmem:[#allocation8 + $0x50] sm:$0xff] %v1675_v8   ;;  %v1011_v20 = vmul.f32 0.01, %v816_v10  ;;  %v817_v22 = vadd.f32 %v2124_v40, %v636_v18 }
 0x14f   :  { %1807 = vst [vmem:[#allocation8 + $0xd0] sm:$0xff] %v1755_v9   ;;  %v1043_v21 = vmul.f32 0.01, %v848_v11  ;;  %v849_v23 = vadd.f32 %v2124_v40, %v764_v19  ;;  %v1014_v24 = vmul.f32 0.01, %v819_v16  ;;  %v1077_v28 = vmax.f32 %v818_v4, %v1013_v14 }
 0x150   :  { %v1046_v25 = vmul.f32 0.01, %v851_v17  ;;  %v1012_v26 = vmul.f32 0.01, %v817_v22  ;;  %v1109_v29 = vmax.f32 %v850_v5, %v1045_v15  ;;  %v1075_v32 = vmax.f32 %v816_v10, %v1011_v20 }
 0x151   :  { %v1044_v27 = vmul.f32 0.01, %v849_v23  ;;  %v1078_v30 = vmax.f32 %v819_v16, %v1014_v24  ;;  %v1107_v33 = vmax.f32 %v848_v11, %v1043_v21 }
 0x152   :  { %v1110_v31 = vmax.f32 %v851_v17, %v1046_v25  ;;  %v1076_v34 = vmax.f32 %v817_v22, %v1012_v26  ;;  %v1899_v36 = vpop.f32.mrb[28].mxu0  ;;  %v1931_v37 = vpop.f32.mrb[28].mxu1 }
 0x153   :  { %v1108_v35 = vmax.f32 %v849_v23, %v1044_v27  ;;  %v1690_v38 = vpack.c.bf16 %v1078_v30, %v1077_v28  ;;  %v822_v41 = vadd.f32 %v1899_v36, %v2124_v40  ;;  %v854_v42 = vadd.f32 %v1931_v37, %v2124_v40  ;;  %v649_v43 = vpop.f32.mrb[29].mxu0  ;;  %v777_v44 = vpop.f32.mrb[29].mxu1 }
 0x154   :  { %v1770_v39 = vpack.c.bf16 %v1110_v31, %v1109_v29  ;;  %v1685_v45 = vpack.c.bf16 %v1076_v34, %v1075_v32  ;;  %v820_v47 = vadd.f32 %v2124_v40, %v649_v43  ;;  %v852_v48 = vadd.f32 %v2124_v40, %v777_v44  ;;  %v1900_v49 = vpop.f32.mrb[30].mxu0  ;;  %v1932_v50 = vpop.f32.mrb[30].mxu1 }
 0x155   :  { %v1765_v46 = vpack.c.bf16 %v1108_v35, %v1107_v33  ;;  %1794 = vst [vmem:[#allocation8 + $0x68] sm:$0xff] %v1690_v38   ;;  %v1017_v51 = vmul.f32 0.01, %v822_v41  ;;  %v1049_v52 = vmul.f32 0.01, %v854_v42  ;;  %v823_v53 = vadd.f32 %v1900_v49, %v2124_v40  ;;  %v652_v55 = vpop.f32.mrb[31].mxu0 }
 0x156   :  { %1810 = vst [vmem:[#allocation8 + $0xe8] sm:$0xff] %v1770_v39   ;;  %v855_v54 = vadd.f32 %v1932_v50, %v2124_v40  ;;  %v780_v56 = vpop.f32.mrb[31].mxu1  ;;  %1793 = vst [vmem:[#allocation8 + $0x60] sm:$0xff] %v1685_v45   ;;  %v1015_v57 = vmul.f32 0.01, %v820_v47  ;;  %v821_v59 = vadd.f32 %v2124_v40, %v652_v55 }
 0x157   :  { %1809 = vst [vmem:[#allocation8 + $0xe0] sm:$0xff] %v1765_v46   ;;  %v1047_v58 = vmul.f32 0.01, %v852_v48  ;;  %v853_v60 = vadd.f32 %v2124_v40, %v780_v56  ;;  %v1018_v61 = vmul.f32 0.01, %v823_v53  ;;  %v1081_v1 = vmax.f32 %v822_v41, %v1017_v51 }
 0x158   :  { %v1050_v62 = vmul.f32 0.01, %v855_v54  ;;  %v1016_v63 = vmul.f32 0.01, %v821_v59  ;;  %v1113_v2 = vmax.f32 %v854_v42, %v1049_v52  ;;  %v1079_v5 = vmax.f32 %v820_v47, %v1015_v57 }
 0x159   :  { %v1048_v0 = vmul.f32 0.01, %v853_v60  ;;  %v1082_v3 = vmax.f32 %v823_v53, %v1018_v61  ;;  %v1111_v6 = vmax.f32 %v852_v48, %v1047_v58 }
 0x15a   :  { %v1114_v4 = vmax.f32 %v855_v54, %v1050_v62  ;;  %v1080_v7 = vmax.f32 %v821_v59, %v1016_v63 }
 0x15b   :  { %v1112_v8 = vmax.f32 %v853_v60, %v1048_v0  ;;  %v1700_v9 = vpack.c.bf16 %v1082_v3, %v1081_v1 }
 0x15c   :  { %v1780_v10 = vpack.c.bf16 %v1114_v4, %v1113_v2  ;;  %v1695_v11 = vpack.c.bf16 %v1080_v7, %v1079_v5 }
 0x15d   :  { %v1775_v12 = vpack.c.bf16 %v1112_v8, %v1111_v6  ;;  %1796 = vst [vmem:[#allocation8 + $0x78] sm:$0xff] %v1700_v9  }
 0x15e   :  { %1812 = vst [vmem:[#allocation8 + $0xf8] sm:$0xff] %v1780_v10   ;;  %1795 = vst [vmem:[#allocation8 + $0x70] sm:$0xff] %v1695_v11  }
 0x15f   :  { %1811 = vst [vmem:[#allocation8 + $0xf0] sm:$0xff] %v1775_v12  }
 0x160   :  { %2049 = shalt.err (!%p2046_p6)
}
 0x161   :  { %s2050_s15 = scalar_lea.hbm %s2208_s3, 4096 }
 0x162   :  { %p2051_p7 = scmp.ne.s32.totalorder %s2208_s3, %s2050_s15  ;;  %p2054_p8 = scmp.lt.u32.totalorder %s2050_s15, %s2208_s3 }
 0x164   :  { %p2056_p9 = pnand %p2054_p8, %p2051_p7 }
 0x166   :  { %2059 = shalt.err (!%p2056_p9)
}
 0x167   :  { %1446 = dma.vmem_to_hbm [thread:$0]  %s1441_s11, 4096, %s2208_s3, [#allocation5], %s2067_s22, %s2067_s22, %s2068_s23  }
 0x168   :  { %2064 = dma.done.wait [#allocation5], 4096  }
 0x169   :  { %2065 = vsyncadd [#allocation5], 4294963200 }
 0x16a   :  { %1450 = vsyncpa [#allocation4], 1 }
 0x16b   :  { %1451 = vsyncpa [#allocation7], 1 }
 0x16c   :  { %1452 = vsyncpa [#allocation5], 1 }

</bundles_post_ra>
